<compile_context>
chip_gen: v6e
topology: v6e:2x2x1
jax: 0.10.0
libtpu: 0.0.40
codegen_flags: <defaults>
</compile_context>

<pallas_src>
import functools

import jax
import jax.numpy as jnp
from jax.experimental import pallas as pl
from jax.experimental.pallas import tpu as pltpu


def _cdiv(a, b):
    return -(-a // b)


def _focal_loss_kernel(x_ref, t_ref, a_ref, o_ref, *, gamma, n_total, has_alpha):
    p = pl.program_id(0)          # parallel (per-core) axis
    j = pl.program_id(1)          # reduction axis over row-blocks
    n_j = pl.num_programs(1)

    @pl.when(j == 0)
    def _():
        o_ref[...] = jnp.zeros_like(o_ref)

    x = x_ref[...].astype(jnp.float32)        # (tm, C) logits (cast in VMEM)
    t = t_ref[...]                            # (tm, 1) int32 targets

    tm = x.shape[0]

    # log-sum-exp along the class (lane) axis (row max -> EUP exp -> XLU sum)
    m = jnp.max(x, axis=-1, keepdims=True)
    sumexp = jnp.sum(jnp.exp(x - m), axis=-1, keepdims=True)
    lse = m + jnp.log(sumexp)                                     # (tm, 1)

    # fused one-hot gathers: x[t] (and alpha[t] if given) in single tile passes
    col = jax.lax.broadcasted_iota(jnp.int32, x.shape, 1)
    onehot = (col == t).astype(jnp.float32)                       # (tm, C)
    x_t = jnp.sum(onehot * x, axis=-1, keepdims=True)             # (tm, 1)

    ce = lse - x_t                                                # -logp[t] >= 0
    if has_alpha:
        alpha = a_ref[...].astype(jnp.float32)                    # (1, C)
        a_t = jnp.sum(onehot * alpha, axis=-1, keepdims=True)     # (tm, 1)
        ce = a_t * ce

    pt = jnp.exp(-ce)
    one_minus_pt = jnp.maximum(1.0 - pt, 0.0)   # clamp: pt may round above 1

    g = float(gamma)
    if g >= 0.0 and g == int(g) and int(g) <= 8:
        mod = jnp.ones_like(one_minus_pt)
        for _ in range(int(g)):                 # gamma=2 -> two multiplies
            mod = mod * one_minus_pt
    else:
        mod = jnp.power(one_minus_pt, jnp.float32(g))
    focal = mod * ce                           # (tm, 1)

    # mask rows past N (partial last tile and over-provisioned / clamped tiles)
    base = (p * n_j + j) * tm
    row = base + jax.lax.broadcasted_iota(jnp.int32, (tm, 1), 0)
    focal = jnp.where(row < n_total, focal, 0.0)

    o_ref[...] = o_ref[...] + jnp.sum(focal)


def focal_loss(logits, targets, *, alpha=None, gamma=2.0, reduction="mean",
               block_rows=None, tile_bytes=8 * 1024 * 1024, num_cores=2):
    """Pallas FocalLoss forward. logits: (N, C) float, targets: (N,) int."""
    n, c = logits.shape
    itemsize = jnp.dtype(logits.dtype).itemsize
    # min sublane alignment per dtype packing: f32 -> 8, bf16 -> 16, int8 -> 32
    row_align = max(8, 32 // itemsize)

    # Pick the largest row tile that fits the VMEM byte budget (double-buffered
    # by the pipeline), capped at the (padded) problem size.
    if block_rows is None:
        block_rows = tile_bytes // (c * itemsize)
    block_rows = min(int(block_rows), _cdiv(n, row_align) * row_align)
    block_rows = max(row_align, (block_rows // row_align) * row_align)

    n_blocks = _cdiv(n, block_rows)
    num_par = max(1, min(int(num_cores), n_blocks))   # v7x: 2 TCs; v5e/v6e: 1
    bpp = _cdiv(n_blocks, num_par)                    # blocks per parallel slice
    max_block = n_blocks - 1

    targets2d = targets.astype(jnp.int32).reshape(n, 1)
    has_alpha = alpha is not None
    if has_alpha:
        alpha_arr = jnp.asarray(alpha, dtype=jnp.float32).reshape(1, c)
    else:
        alpha_arr = jnp.ones((1, c), dtype=jnp.float32)   # DMA'd but unused

    def row_block_map(p, j):
        # clamp so over-provisioned grid steps never DMA past the array;
        # their contribution is masked to zero inside the kernel.
        return (jnp.minimum(p * bpp + j, max_block), 0)

    tile_bytes_actual = block_rows * c * itemsize
    vmem_limit = int(max(
        32 * 1024 * 1024,
        2 * tile_bytes_actual + 2 * block_rows * 4 + 8 * c * 4 + (4 << 20)))

    kernel = functools.partial(_focal_loss_kernel, gamma=float(gamma),
                               n_total=n, has_alpha=has_alpha)

    partials = pl.pallas_call(
        kernel,
        out_shape=jax.ShapeDtypeStruct((num_par, 1, 1), jnp.float32),
        grid_spec=pltpu.PrefetchScalarGridSpec(
            num_scalar_prefetch=0,
            grid=(num_par, bpp),
            in_specs=[
                pl.BlockSpec((block_rows, c), row_block_map),   # logits tile
                pl.BlockSpec((block_rows, 1), row_block_map),   # target tile
                pl.BlockSpec((1, c), lambda p, j: (0, 0)),      # alpha (resident)
            ],
            # per-core partial sum, resident across the reduction axis j
            out_specs=pl.BlockSpec((1, 1, 1), lambda p, j: (p, 0, 0)),
        ),
        compiler_params=pltpu.CompilerParams(
            dimension_semantics=("parallel", "arbitrary"),
            vmem_limit_bytes=vmem_limit,
        ),
    )(logits, targets2d, alpha_arr)

    total = jnp.sum(partials)
    if reduction == "mean":
        return total / jnp.float32(n)
    elif reduction == "sum":
        return total
    # TODO(synk): reduction='none' (per-sample focal vector) not implemented.
    raise NotImplementedError("only reduction='mean'/'sum' are supported")


def _focal_loss_ref(logits, targets, *, alpha=None, gamma=2.0):
    logp = jax.nn.log_softmax(logits.astype(jnp.float32), axis=-1)
    picked = jnp.take_along_axis(logp, targets[:, None].astype(jnp.int32), axis=-1)[:, 0]
    w = 1.0 if alpha is None else jnp.asarray(alpha, jnp.float32)[targets]
    ce = -w * picked
    pt = jnp.exp(-ce)
    return jnp.mean((1.0 - pt) ** gamma * ce)


if __name__ == "__main__":
    key = jax.random.PRNGKey(0)
    k1, k2, k3, k4, k5 = jax.random.split(key, 5)

    # Test 1: small, no alpha.
    N, C = 16, 32
    logits = jax.random.normal(k1, (N, C), dtype=jnp.float32)
    targets = jax.random.randint(k2, (N,), 0, C, dtype=jnp.int32)
    out = jax.block_until_ready(focal_loss(logits, targets, gamma=2.0))
    ref = _focal_loss_ref(logits, targets, gamma=2.0)
    assert jnp.allclose(out, ref, rtol=1e-5, atol=1e-5), (out, ref)

    # Test 2: ragged N with class weights -> exercises last-tile masking and
    # the fused alpha gather.
    N2, C2 = 21, 48
    logits2 = jax.random.normal(k3, (N2, C2), dtype=jnp.float32)
    targets2 = jax.random.randint(k4, (N2,), 0, C2, dtype=jnp.int32)
    alpha2 = jax.random.uniform(k5, (C2,), minval=0.5, maxval=1.5, dtype=jnp.float32)
    out2 = jax.block_until_ready(focal_loss(logits2, targets2, alpha=alpha2, gamma=2.0))
    ref2 = _focal_loss_ref(logits2, targets2, alpha=alpha2, gamma=2.0)
    assert jnp.allclose(out2, ref2, rtol=1e-5, atol=1e-5), (out2, ref2)

    # Test 3: multi-block grid with an odd block count -> exercises the 2-core
    # parallel split and the clamped over-provisioned tail block.
    N3, C3 = 600, 64
    logits3 = jax.random.normal(k1, (N3, C3), dtype=jnp.float32) * 2.0
    targets3 = jax.random.randint(k2, (N3,), 0, C3, dtype=jnp.int32)
    out3 = jax.block_until_ready(focal_loss(logits3, targets3, gamma=2.0, block_rows=128))
    ref3 = _focal_loss_ref(logits3, targets3, gamma=2.0)
    assert jnp.allclose(out3, ref3, rtol=1e-5, atol=1e-5), (out3, ref3)

    # Test 4: bf16 logits stay bf16 in HBM (native-dtype DMA, f32 math in VMEM).
    N4, C4 = 40, 32
    logits4 = jax.random.normal(k3, (N4, C4), dtype=jnp.float32).astype(jnp.bfloat16)
    targets4 = jax.random.randint(k4, (N4,), 0, C4, dtype=jnp.int32)
    out4 = jax.block_until_ready(focal_loss(logits4, targets4, gamma=2.0))
    ref4 = _focal_loss_ref(logits4, targets4, gamma=2.0)
    assert jnp.allclose(out4, ref4, rtol=1e-4, atol=1e-4), (out4, ref4)

    print("KERNEL_OK")
</pallas_src>

<mosaic_0001>
module attributes {stable_mosaic.version = 11 : i64} {
  func.func @_focal_loss_kernel(%arg0: i32, %arg1: i32, %arg2: memref<16x32xf32, #tpu.memory_space<vmem>>, %arg3: memref<16x1xi32, #tpu.memory_space<vmem>>, %arg4: memref<1x32xf32, #tpu.memory_space<vmem>>, %arg5: memref<1x1x1xf32, #tpu.memory_space<vmem>>) attributes {dimension_semantics = [#tpu.dimension_semantics<parallel>, #tpu.dimension_semantics<arbitrary>], iteration_bounds = array<i64: 1, 1>, scalar_prefetch = 0 : i64, scratch_operands = 0 : i64, tpu.core_type = #tpu.core_type<tc>, window_params = [{transform_indices = @transform_0, window_bounds = array<i64: 16, 32>}, {transform_indices = @transform_1, window_bounds = array<i64: 16, 1>}, {pipeline_mode = #tpu.pipeline_mode<synchronous>, transform_indices = @transform_2, window_bounds = array<i64: 1, 32>}, {transform_indices = @transform_3, window_bounds = array<i64: 1, 1, 1>}]} {
    %c0_i32 = arith.constant 0 : i32
    %0 = arith.cmpi eq, %arg1, %c0_i32 : i32
    %1 = arith.extui %0 : i1 to i32
    %c0_i32_0 = arith.constant 0 : i32
    %2 = arith.cmpi ne, %1, %c0_i32_0 : i32
    scf.if %2 {
      %cst_19 = arith.constant 0.000000e+00 : f32
      %52 = vector.broadcast %cst_19 : f32 to vector<1x1x1xf32>
      %c0_20 = arith.constant 0 : index
      %c0_21 = arith.constant 0 : index
      %c0_22 = arith.constant 0 : index
      %53 = vector.load %arg5[%c0_20, %c0_21, %c0_22] : memref<1x1x1xf32, #tpu.memory_space<vmem>>, vector<1x1x1xf32>
      tpu.vector_store %arg5[%c0_20, %c0_21, %c0_22], %52 {strides = array<i32>} : memref<1x1x1xf32, #tpu.memory_space<vmem>>, vector<1x1x1xf32>,
    } else {
    }
    %c0 = arith.constant 0 : index
    %c0_1 = arith.constant 0 : index
    %3 = vector.load %arg2[%c0, %c0_1] : memref<16x32xf32, #tpu.memory_space<vmem>>, vector<16x32xf32>
    %c0_2 = arith.constant 0 : index
    %c0_3 = arith.constant 0 : index
    %4 = vector.load %arg3[%c0_2, %c0_3] : memref<16x1xi32, #tpu.memory_space<vmem>>, vector<16x1xi32>
    %cst = arith.constant dense<0xFF800000> : vector<16xf32>
    %5 = vector.multi_reduction <maximumf>, %3, %cst [1] : vector<16x32xf32> to vector<16xf32>
    %6 = vector.shape_cast %5 : vector<16xf32> to vector<16x1xf32>
    %7 = vector.broadcast %6 : vector<16x1xf32> to vector<16x32xf32>
    %8 = arith.subf %3, %7 : vector<16x32xf32>
    %9 = math.exp %8 : vector<16x32xf32>
    %cst_4 = arith.constant dense<0.000000e+00> : vector<16xf32>
    %10 = vector.multi_reduction <add>, %9, %cst_4 [1] : vector<16x32xf32> to vector<16xf32>
    %11 = vector.shape_cast %10 : vector<16xf32> to vector<16x1xf32>
    %12 = math.log %11 : vector<16x1xf32>
    %13 = arith.addf %6, %12 : vector<16x1xf32>
    %14 = tpu.iota {dimensions = array<i32: 1>} : vector<16x32xi32>
    %15 = vector.broadcast %4 : vector<16x1xi32> to vector<16x32xi32>
    %16 = arith.cmpi eq, %14, %15 : vector<16x32xi32>
    %17 = arith.extui %16 : vector<16x32xi1> to vector<16x32xi32>
    %18 = arith.sitofp %17 : vector<16x32xi32> to vector<16x32xf32>
    %19 = arith.mulf %18, %3 : vector<16x32xf32>
    %cst_5 = arith.constant dense<0.000000e+00> : vector<16xf32>
    %20 = vector.multi_reduction <add>, %19, %cst_5 [1] : vector<16x32xf32> to vector<16xf32>
    %21 = vector.shape_cast %20 : vector<16xf32> to vector<16x1xf32>
    %22 = arith.subf %13, %21 : vector<16x1xf32>
    %cst_6 = arith.constant 0.000000e+00 : f32
    %23 = vector.broadcast %cst_6 : f32 to vector<16x1xf32>
    %24 = arith.subf %23, %22 : vector<16x1xf32>
    %25 = math.exp %24 : vector<16x1xf32>
    %cst_7 = arith.constant 1.000000e+00 : f32
    %26 = vector.broadcast %cst_7 : f32 to vector<16x1xf32>
    %27 = arith.subf %26, %25 : vector<16x1xf32>
    %cst_8 = arith.constant 0.000000e+00 : f32
    %28 = vector.broadcast %cst_8 : f32 to vector<16x1xf32>
    %29 = arith.maximumf %27, %28 : vector<16x1xf32>
    %cst_9 = arith.constant 1.000000e+00 : f32
    %30 = vector.broadcast %cst_9 : f32 to vector<16x1xf32>
    %31 = arith.mulf %30, %29 : vector<16x1xf32>
    %32 = arith.mulf %31, %29 : vector<16x1xf32>
    %33 = arith.mulf %32, %22 : vector<16x1xf32>
    %c1_i32 = arith.constant 1 : i32
    %34 = arith.muli %arg0, %c1_i32 : i32
    %35 = arith.addi %34, %arg1 : i32
    %c16_i32 = arith.constant 16 : i32
    %36 = arith.muli %35, %c16_i32 : i32
    %37 = tpu.iota {dimensions = array<i32: 0>} : vector<16x1xi32>
    %38 = vector.broadcast %36 : i32 to vector<16x1xi32>
    %39 = arith.addi %38, %37 : vector<16x1xi32>
    %c16_i32_10 = arith.constant 16 : i32
    %40 = vector.broadcast %c16_i32_10 : i32 to vector<16x1xi32>
    %41 = arith.cmpi slt, %39, %40 : vector<16x1xi32>
    %cst_11 = arith.constant 0.000000e+00 : f32
    %42 = vector.broadcast %cst_11 : f32 to vector<16x1xf32>
    %43 = arith.select %41, %33, %42 : vector<16x1xi1>, vector<16x1xf32>
    %c0_12 = arith.constant 0 : index
    %c0_13 = arith.constant 0 : index
    %c0_14 = arith.constant 0 : index
    %44 = vector.load %arg5[%c0_12, %c0_13, %c0_14] : memref<1x1x1xf32, #tpu.memory_space<vmem>>, vector<1x1x1xf32>
    %45 = vector.shape_cast %43 : vector<16x1xf32> to vector<1x16x1xf32>
    %cst_15 = arith.constant dense<0.000000e+00> : vector<1xf32>
    %46 = vector.multi_reduction <add>, %45, %cst_15 [1, 2] : vector<1x16x1xf32> to vector<1xf32>
    %47 = vector.shape_cast %46 : vector<1xf32> to vector<1x1x1xf32>
    %48 = vector.extract %47[0, 0, 0] : f32 from vector<1x1x1xf32>
    %49 = vector.broadcast %48 : f32 to vector<1x1x1xf32>
    %50 = arith.addf %44, %49 : vector<1x1x1xf32>
    %c0_16 = arith.constant 0 : index
    %c0_17 = arith.constant 0 : index
    %c0_18 = arith.constant 0 : index
    %51 = vector.load %arg5[%c0_16, %c0_17, %c0_18] : memref<1x1x1xf32, #tpu.memory_space<vmem>>, vector<1x1x1xf32>
    tpu.vector_store %arg5[%c0_16, %c0_17, %c0_18], %50 {strides = array<i32>} : memref<1x1x1xf32, #tpu.memory_space<vmem>>, vector<1x1x1xf32>,
    return
  }
  func.func @transform_0(%arg0: i32, %arg1: i32) -> (i32, i32) {
    %c1_i32 = arith.constant 1 : i32
    %0 = arith.muli %arg0, %c1_i32 : i32
    %1 = arith.addi %0, %arg1 : i32
    %c0_i32 = arith.constant 0 : i32
    %2 = arith.minsi %1, %c0_i32 : i32
    %c0_i32_0 = arith.constant 0 : i32
    %c0_i32_1 = arith.constant 0 : i32
    return %2, %c0_i32_0 : i32, i32
  }
  func.func @transform_1(%arg0: i32, %arg1: i32) -> (i32, i32) {
    %c1_i32 = arith.constant 1 : i32
    %0 = arith.muli %arg0, %c1_i32 : i32
    %1 = arith.addi %0, %arg1 : i32
    %c0_i32 = arith.constant 0 : i32
    %2 = arith.minsi %1, %c0_i32 : i32
    %c0_i32_0 = arith.constant 0 : i32
    %c0_i32_1 = arith.constant 0 : i32
    return %2, %c0_i32_0 : i32, i32
  }
  func.func @transform_2(%arg0: i32, %arg1: i32) -> (i32, i32) {
    %c0_i32 = arith.constant 0 : i32
    %c0_i32_0 = arith.constant 0 : i32
    %c0_i32_1 = arith.constant 0 : i32
    return %c0_i32, %c0_i32_0 : i32, i32
  }
  func.func @transform_3(%arg0: i32, %arg1: i32) -> (i32, i32, i32) {
    %c0_i32 = arith.constant 0 : i32
    %c0_i32_0 = arith.constant 0 : i32
    %c0_i32_1 = arith.constant 0 : i32
    return %arg0, %c0_i32, %c0_i32_0 : i32, i32, i32
  }
}

</mosaic_0001>

<bundles_post_ra>
// kernel: tpu_custom_call.1
= control target key start
LH: loop header
LB: loop body
LE: loop exit
PB: predicated region body
PF: predicated region fallthrough
CT: control target
= control target key end

     0   :  { %vm89_vm0 = vcmask 261120   ;;  %v251_v4 = vmov 0   ;;  %s297_s0 = inlined_call_operand.vmem [shape: f32[16,32], index: 0, kind: input, shape index: {}]   ;;  %s298_s1 = inlined_call_operand.vmem [shape: s32[16,1], index: 1, kind: input, shape index: {}]   ;;  %s299_s2 = inlined_call_operand.vmem [shape: f32[1,32], index: 2, kind: input, shape index: {}]   ;;  %s300_s3 = inlined_call_operand.hbm [shape: f32[1,1,1], index: 3, kind: output, shape index: {}]  }
   0x1   :  { %v85_v0 = vld [vmem:[%s297_s0] sm:$0xff]  ;;  %v86_v1 = vld [vmem:[%s297_s0 + $0x8] sm:$0xff]  ;;  %215 = vset.pattern.permute.xlu1 %v251_v4  ;;  %216 = vset.pattern.permute.xlu0 %v251_v4 }
   0x2   :  { %v87_v2 = vld [vmem:[%s298_s1] sm:$0xff]  ;;  %v90_v3 = vsel %vm89_vm0, %v85_v0, -inf }
   0x3   :  { %8 = vsyncpa [#allocation3], 0  ;;  %91 = vmax.xlane.f32.xlu0 %v90_v3  ;;  %117 = vperm.xlu1 %215, %v87_v2   ;;  %v93_v5 = vsel %vm89_vm0, %v86_v1, -inf  ;;  %v88_v6 = vld [vmem:[%s298_s1 + $0x8] sm:$0xff]  ;;  %vm83_vm1 = vcmask 0   ;;  %v252_v7 = vmov 0.0   ;;  %v114_v11 = vlaneseq }
   0x4   :  { %84 = vst.msk [vmem:[#allocation2] sm:$0x1] %vm83_vm1, %v252_v7  ;;  %vm165_vm4 = vcmask 7168   ;;  %s253_s0 = smov [#allocation2]  }
   0x5   :  { %v115_v16 = vand.u32 127, %v114_v11  ;;  %s188_s1 = sshll.u32 %s253_s0, 4  ;;  %s189_s1 = int_to_ptr.vmem [resolvable:$true] %s188_s1 }
   0x6   :  { %s229_s20 = scalar_lea.vmem %s189_s1, 16  ;;  %s233_s21 = scalar_lea.vmem %s189_s1, 32 }
   0x7   :  { %94 = vmax.xlane.f32.xlu0 %v93_v5  ;;  %120 = vperm.xlu1 %215, %v88_v6   ;;  %p230_p0 = scmp.ne.s32.totalorder %s189_s1, %s229_s20  ;;  %p234_p1 = scmp.lt.s32.totalorder %s189_s1, %s189_s1 }
   0x8   :  { %p235_p2 = scmp.lt.s32.totalorder %s233_s21, %s229_s20 }
   0xa   :  { %p236_p3 = por %p235_p2, %p234_p1 }
   0xc   :  { %p237_p4 = pnand %p236_p3, %p230_p0 }
  0x7e   :  { %v118_v14 = vpop.permute.xlu1 %117 }
  0x7f   :  { %vm122_vm2 = vcmp.eq.s32.totalorder %v115_v16, %v118_v14 }
  0x80   :  { %v208_v18 = vsel %vm122_vm2, 1.0, %v252_v7 }
  0x81   :  { %v128_v19 = vmul.f32 %v208_v18, %v85_v0 }
  0x82   :  { %v121_v17 = vpop.permute.xlu1 %120 }
  0x83   :  { %vm123_vm3 = vcmp.eq.s32.totalorder %v115_v16, %v121_v17  ;;  %v130_v23 = vsel %vm89_vm0, %v128_v19, 0.0 }
  0x84   :  { %v209_v21 = vsel %vm123_vm3, 1.0, %v252_v7 }
  0x85   :  { %v129_v24 = vmul.f32 %v209_v21, %v86_v1 }
  0x87   :  { %v133_v27 = vsel %vm89_vm0, %v129_v24, 0.0 }
  0x8c   :  { %v92_v8 = vpop.xlane.xlu0 %91 }
  0x8d   :  { %v96_v9 = vsub.f32 %v85_v0, %v92_v8  ;;  %v164_v0 = vld [vmem:[#allocation2] sm:$0x1] }
  0x8f   :  { %v98_v10 = vmul.f32 1.442695, %v96_v9 }
  0x90   :  { %v95_v12 = vpop.xlane.xlu0 %94 }
  0x91   :  { %217 = vpow2.f32 %v98_v10  ;;  %v97_v13 = vsub.f32 %v86_v1, %v95_v12 }
  0x93   :  { %v100_v15 = vmul.f32 1.442695, %v97_v13 }
  0x95   :  { %219 = vpow2.f32 %v100_v15 }
  0x9e   :  { %v218_v20 = vpop.eup %217 }
  0x9f   :  { %v102_v22 = vsel %vm89_vm0, %v218_v20, 0.0 }
  0xa0   :  { %103 = vadd.xlane.f32.xlu0 %v102_v22 }
  0xa2   :  { %v220_v25 = vpop.eup %219 }
  0xa3   :  { %v105_v26 = vsel %vm89_vm0, %v220_v25, 0.0 }
  0xa4   :  { %106 = vadd.xlane.f32.xlu1 %v105_v26  ;;  %131 = vadd.xlane.f32.xlu0 %v130_v23 }
  0xa8   :  { %134 = vadd.xlane.f32.xlu0 %v133_v27 }
 0x129   :  { %v104_v28 = vpop.xlane.xlu0 %103 }
 0x12a   :  { %221 = vlog2.f32 %v104_v28 }
 0x12d   :  { %v107_v29 = vpop.xlane.xlu1 %106  ;;  %v132_v32 = vpop.xlane.xlu0 %131 }
 0x12e   :  { %223 = vlog2.f32 %v107_v29 }
 0x131   :  { %v135_v39 = vpop.xlane.xlu0 %134 }
 0x137   :  { %v222_v30 = vpop.eup %221 }
 0x138   :  { %v109_v31 = vmul.f32 0.6931472, %v222_v30 }
 0x13a   :  { %v112_v33 = vadd.f32 %v109_v31, %v92_v8 }
 0x13b   :  { %v224_v34 = vpop.eup %223 }
 0x13c   :  { %v111_v35 = vmul.f32 0.6931472, %v224_v34  ;;  %v136_v36 = vsub.f32 %v112_v33, %v132_v32 }
 0x13e   :  { %v138_v37 = vsub.f32 0.0, %v136_v36  ;;  %v113_v38 = vadd.f32 %v111_v35, %v95_v12 }
 0x140   :  { %v140_v40 = vmul.f32 1.442695, %v138_v37  ;;  %v137_v41 = vsub.f32 %v113_v38, %v135_v39 }
 0x142   :  { %225 = vpow2.f32 %v140_v40  ;;  %v139_v42 = vsub.f32 0.0, %v137_v41 }
 0x144   :  { %v142_v43 = vmul.f32 1.442695, %v139_v42 }
 0x146   :  { %227 = vpow2.f32 %v142_v43 }
 0x14f   :  { %v226_v44 = vpop.eup %225 }
 0x150   :  { %v144_v45 = vsub.f32 1.0, %v226_v44 }
 0x152   :  { %v146_v46 = vmax.f32 %v144_v45, 0.0 }
 0x153   :  { %v228_v47 = vpop.eup %227 }
 0x154   :  { %v148_v48 = vmul.f32 %v146_v46, %v146_v46  ;;  %v145_v49 = vsub.f32 1.0, %v228_v47 }
 0x156   :  { %v147_v50 = vmax.f32 %v145_v49, 0.0  ;;  %v150_v51 = vmul.f32 %v148_v48, %v136_v36 }
 0x158   :  { %v149_v52 = vmul.f32 %v147_v50, %v147_v50  ;;  %v166_v54 = vsel %vm165_vm4, %v150_v51, 0.0 }
 0x15a   :  { %v151_v53 = vmul.f32 %v149_v52, %v137_v41 }
 0x15c   :  { %v167_v55 = vsel %vm165_vm4, %v151_v53, 0.0 }
 0x15d   :  { %v168_v56 = vadd.f32 %v167_v55, %v166_v54 }
 0x15f   :  { %169 = vadd.xlane.f32.xlu0 %v168_v56 }
 0x1e8   :  { %v170_v57 = vpop.xlane.xlu0 %169 }
 0x1e9   :  { %v171_v58 = vrot.slane %v170_v57, 4 }
 0x1eb   :  { %v172_v59 = vadd.f32 %v171_v58, %v170_v57 }
 0x1ed   :  { %v173_v60 = vrot.slane %v172_v59, 2 }
 0x1ef   :  { %v174_v61 = vadd.f32 %v173_v60, %v172_v59 }
 0x1f1   :  { %v175_v62 = vrot.slane %v174_v61, 1 }
 0x1f3   :  { %v176_v63 = vadd.f32 %v175_v62, %v174_v61 }
 0x1f5   :  { %210 = vpush %v176_v63 }
 0x226   :  { %s211_s19 = spop %210 }
 0x227   :  { %v178_v1 = vstv %s211_s19 }
 0x228   :  { %v179_v2 = vadd.f32 %v178_v1, %v164_v0 }
 0x22a   :  { %181 = vst.msk [vmem:[#allocation2] sm:$0x1] %vm83_vm1, %v179_v2 }
 0x22b   :  { %240 = shalt.err (!%p237_p4)
}
 0x22c   :  { %191 = dma.vmem_to_hbm [thread:$0]  %s189_s1, 16, %s300_s3, [#allocation3]  }
 0x22d   :  { %249 = dma.done.wait [#allocation3], 16  }
 0x22e   :  { %250 = vsyncadd [#allocation3], 4294967280 }
 0x22f   :  { %195 = vsyncpa [#allocation3], 1 }

</bundles_post_ra>
